<compile_context>
chip_gen: v7x
topology: tpu7x:2x2x1
jax: 0.10.0
libtpu: 0.0.40
codegen_flags: <defaults>
</compile_context>

<pallas_src>
import functools

import numpy as np
import jax
import jax.numpy as jnp
from jax import lax
from jax.experimental import pallas as pl
from jax.experimental.pallas import tpu as pltpu


def _conv_tile(x_ref, h_ref, w_ref, *, nshift, offsets, tile_m):
    """Polyphase transposed-conv contribution for one lane tile.

    x_ref : (Cin_p, tile_m)          base-window columns of this tile (post-ReLU)
    h_ref : (Cin_p, HALO)            the next HALO columns (halo for the shifted windows)
    w_ref : (nshift, P*Cout, Cin_p)  polyphase weights
    returns (P*Cout, tile_m) float32
    """
    x_cat = jnp.concatenate([x_ref[...], h_ref[...]], axis=1)      # (Cin_p, tile_m+HALO)
    width = x_cat.shape[1]
    acc = None
    for sidx in range(nshift):
        off = int(offsets[sidx])
        if off == 0:
            xs = x_cat[:, :tile_m]
        else:
            # Rotate left by `off` (XLU lane rotation), then take the aligned first
            # tile_m lanes: xs[:, j] == x_cat[:, j + off].
            xs = pltpu.roll(x_cat, shift=width - off, axis=1)[:, :tile_m]
        part = jnp.dot(w_ref[sidx], xs, preferred_element_type=jnp.float32)
        acc = part if acc is None else acc + part
    return acc


def _stats_kernel(x_ref, h_ref, w_ref, o_ref, *, nshift, offsets, tile_m):
    """Pass 1: per-tile partial BN sums (sum, sum^2) per (phase, Cout) row."""
    y = _conv_tile(x_ref, h_ref, w_ref, nshift=nshift, offsets=offsets, tile_m=tile_m)
    o_ref[0, :, 0:1] = jnp.sum(y, axis=1, keepdims=True)
    o_ref[0, :, 1:2] = jnp.sum(y * y, axis=1, keepdims=True)


def _norm_kernel(*refs, nshift, offsets, tile_m, apply_dropout, keep_thresh):
    """Pass 2: recompute the (cheap) conv tile, apply y*scale + shift (+ dropout)."""
    if apply_dropout:
        seed_ref, x_ref, h_ref, w_ref, ss_ref, o_ref = refs
    else:
        x_ref, h_ref, w_ref, ss_ref, o_ref = refs
    y = _conv_tile(x_ref, h_ref, w_ref, nshift=nshift, offsets=offsets, tile_m=tile_m)
    out = y * ss_ref[:, 0:1] + ss_ref[:, 1:2]        # 1/(1-p) already folded in when training
    if apply_dropout:
        # TODO(synk): TPU hardware PRNG mask; statistically correct inverted dropout but
        # not bit-identical to torch.nn.Dropout's RNG stream.
        pltpu.prng_seed(seed_ref[0] + pl.program_id(0))            # distinct stream per tile
        bits = pltpu.prng_random_bits(out.shape)
        r24 = lax.shift_right_logical(bits, jnp.asarray(8, bits.dtype))
        out = jnp.where(r24 < jnp.asarray(keep_thresh, r24.dtype), out, 0.0)
    o_ref[...] = out.astype(o_ref.dtype)


@functools.partial(jax.jit, static_argnames=("stride", "eps", "dropout_rate",
                                             "training_dropout", "dropout_seed", "tile_m"))
def conv2d_transpose_batchnorm(x, w, gamma, beta, *, stride=2, eps=1e-5,
                               dropout_rate=0.2, training_dropout=False,
                               dropout_seed=0, tile_m=1024):
    """x: (N, Cin, H, W) NCHW; w: (Cin, Cout, K, K) PyTorch ConvTranspose2d layout;
    gamma/beta: (Cout,) BatchNorm2d affine parameters. Returns (N, Cout, Ho, Wo) f32."""
    N, Cin, H, W = x.shape
    Cin_w, Cout, K, K2 = w.shape
    assert Cin == Cin_w and K == K2
    if training_dropout:
        assert 0.0 <= dropout_rate < 1.0

    s = int(stride)
    SH = -(-K // s)                     # taps per output phase per spatial dim
    nshift = SH * SH                    # distinct shifted input windows
    P = s * s                           # output phases
    Hg, Wg = H + SH - 1, W + SH - 1     # per-phase output grid (garbage tail sliced off)
    Ho, Wo = (H - 1) * s + K, (W - 1) * s + K
    M = N * Hg * Wg
    PCout = P * Cout
    Cin_p = 8 * (-(-Cin // 8))          # pad channels to full sublanes
    f32 = jnp.float32

    # ---- tiling: lane-dense, 128-divisible M tiles + a 128-lane halo ------------------
    max_off = (SH - 1) * (Wg + 1)                       # largest in-tile window shift
    HALO = max(128, 128 * (-(-max_off // 128)))
    TM = min(int(tile_m), 128 * (-(-M // 128)))
    TM = HALO * (-(-TM // HALO))                        # TM % HALO == 0, TM % 128 == 0
    n_tiles = -(-M // TM)
    Mpad = n_tiles * TM
    Mtot = Mpad + HALO                                  # + halo for the last tile
    # flat offsets of the SH*SH shifted windows inside the padded base window
    # (wrap-around positions land in zero padding -> exact; verified for K=3, s=2).
    offsets = tuple(th * Wg + tw for th in range(SH) for tw in range(SH))

    # ---- wrapper-side layout plumbing --------------------------------------------------
    # ReLU (commutes with zero padding) + pad + flatten the single base window; shifted
    # windows are formed in-kernel from this one copy.
    xr = jnp.maximum(x, 0.0).astype(f32)
    xt = jnp.pad(jnp.transpose(xr, (1, 0, 2, 3)),
                 ((0, 0), (0, 0), (SH - 1, SH - 1), (SH - 1, SH - 1)))
    x_flat = xt[:, :, :Hg, :Wg].reshape(Cin, M)
    x_flat = jnp.pad(x_flat, ((0, Cin_p - Cin), (0, Mtot - M)))     # (Cin_p, Mtot)

    # Polyphase weight (nshift, P*Cout, Cin_p) via ONE gather over static index arrays.
    kh = np.zeros((nshift, P), np.int32)
    kw = np.zeros((nshift, P), np.int32)
    valid = np.zeros((nshift, P), np.float32)
    for ph in range(s):
        for pw in range(s):
            p = ph * s + pw
            for th in range(SH):
                for tw in range(SH):
                    sidx = th * SH + tw
                    a = ph + s * (SH - 1 - th)
                    b = pw + s * (SH - 1 - tw)
                    ok = (a < K) and (b < K)
                    kh[sidx, p] = min(a, K - 1)
                    kw[sidx, p] = min(b, K - 1)
                    valid[sidx, p] = 1.0 if ok else 0.0
    wt = w.astype(f32)
    taps = wt[:, :, jnp.asarray(kh), jnp.asarray(kw)] * jnp.asarray(valid)  # (Cin,Cout,ns,P)
    w3 = jnp.transpose(taps, (2, 3, 1, 0)).reshape(nshift, PCout, Cin)
    if Cin_p != Cin:
        w3 = jnp.pad(w3, ((0, 0), (0, 0), (0, Cin_p - Cin)))

    xspec = pl.BlockSpec((Cin_p, TM), lambda t: (0, t))
    hspec = pl.BlockSpec((Cin_p, HALO), lambda t: (0, (t + 1) * (TM // HALO)))
    wspec = pl.BlockSpec((nshift, PCout, Cin_p), lambda t: (0, 0, 0))

    flops = 2 * PCout * Cin_p * nshift * Mpad
    x_bytes = Cin_p * (Mpad + n_tiles * HALO) * 4 + nshift * PCout * Cin_p * 4
    cparams = pltpu.CompilerParams(dimension_semantics=("parallel",),
                                   vmem_limit_bytes=32 * 1024 * 1024)

    # ---- pass 1: conv + per-tile partial BN sums ---------------------------------------
    stats_kernel = functools.partial(_stats_kernel, nshift=nshift, offsets=offsets, tile_m=TM)
    partials = pl.pallas_call(
        stats_kernel,
        out_shape=jax.ShapeDtypeStruct((n_tiles, PCout, 2), f32),
        grid=(n_tiles,),
        in_specs=[xspec, hspec, wspec],
        out_specs=pl.BlockSpec((1, PCout, 2), lambda t: (t, 0, 0)),
        compiler_params=cparams,
        cost_estimate=pl.CostEstimate(flops=flops, transcendentals=0,
                                      bytes_accessed=x_bytes + n_tiles * PCout * 2 * 4),
    )(x_flat, x_flat, w3)

    # Tiny reduction + BN scale/shift on (Cout,)-sized data (out-of-range phase positions
    # and lane padding are exact zeros, so plain sums with 1/(N*Ho*Wo) are exact).
    sums = jnp.sum(partials, axis=0).reshape(P, Cout, 2).sum(axis=0)        # (Cout, 2)
    inv_count = 1.0 / float(N * Ho * Wo)
    mean = sums[:, 0] * inv_count
    var = jnp.maximum(sums[:, 1] * inv_count - mean * mean, 0.0)            # clamp cancellation
    scale = gamma.astype(f32) * lax.rsqrt(var + float(eps))
    shift = beta.astype(f32) - mean * scale
    if training_dropout:
        inv_keep = 1.0 / (1.0 - float(dropout_rate))                        # fold into BN affine
        scale = scale * inv_keep
        shift = shift * inv_keep
    ss = jnp.tile(jnp.stack([scale, shift], axis=1), (P, 1))                # (P*Cout, 2)

    # ---- pass 2: recompute conv tile, apply scale/shift (+ dropout) --------------------
    keep_thresh = int((1.0 - float(dropout_rate)) * (1 << 24))
    norm_kernel = functools.partial(_norm_kernel, nshift=nshift, offsets=offsets, tile_m=TM,
                                    apply_dropout=bool(training_dropout),
                                    keep_thresh=keep_thresh)
    in_specs = [xspec, hspec, wspec, pl.BlockSpec((PCout, 2), lambda t: (0, 0))]
    args = [x_flat, x_flat, w3, ss]
    if training_dropout:
        in_specs = [pl.BlockSpec(memory_space=pltpu.MemorySpace.SMEM)] + in_specs
        args = [jnp.asarray([dropout_seed], jnp.int32)] + args

    y2 = pl.pallas_call(
        norm_kernel,
        out_shape=jax.ShapeDtypeStruct((PCout, Mpad), f32),
        grid=(n_tiles,),
        in_specs=in_specs,
        out_specs=pl.BlockSpec((PCout, TM), lambda t: (0, t)),
        compiler_params=cparams,
        cost_estimate=pl.CostEstimate(flops=flops, transcendentals=0,
                                      bytes_accessed=x_bytes + PCout * 2 * 4 + PCout * Mpad * 4),
    )(*args)

    # ---- interleave the s*s phases back into NCHW (layout plumbing) --------------------
    y = y2[:, :M].reshape(s, s, Cout, N, Hg, Wg)           # (ph, pw, co, n, a, b)
    y = jnp.transpose(y, (3, 2, 4, 0, 5, 1))               # (n, co, a, ph, b, pw)
    y = y.reshape(N, Cout, Hg * s, Wg * s)
    return y[:, :, :Ho, :Wo]


def _reference(x, w, gamma, beta, *, stride=2, eps=1e-5):
    """Pure-JAX reference: ReLU -> transposed conv (via lhs dilation) -> BN(train)."""
    K = w.shape[2]
    x = jnp.maximum(x, 0.0)
    x_nhwc = jnp.transpose(x, (0, 2, 3, 1))
    wf = jnp.transpose(w[:, :, ::-1, ::-1], (2, 3, 0, 1))  # HWIO, flipped
    y = lax.conv_general_dilated(
        x_nhwc, wf, window_strides=(1, 1),
        padding=[(K - 1, K - 1), (K - 1, K - 1)],
        lhs_dilation=(stride, stride),
        dimension_numbers=('NHWC', 'HWIO', 'NHWC'))
    mean = jnp.mean(y, axis=(0, 1, 2), keepdims=True)
    var = jnp.mean((y - mean) ** 2, axis=(0, 1, 2), keepdims=True)
    y = (y - mean) * lax.rsqrt(var + eps) * gamma.reshape(1, 1, 1, -1) \
        + beta.reshape(1, 1, 1, -1)
    return jnp.transpose(y, (0, 3, 1, 2))


if __name__ == "__main__":
    key = jax.random.PRNGKey(0)
    kx, kw, kg, kb = jax.random.split(key, 4)

    N, Cin, H, W = 2, 4, 16, 16
    Cout, K, stride = 8, 3, 2

    x = jax.random.normal(kx, (N, Cin, H, W), jnp.float32)
    w = 0.1 * jax.random.normal(kw, (Cin, Cout, K, K), jnp.float32)   # ConvTranspose2d weight
    gamma = 1.0 + 0.1 * jax.random.normal(kg, (Cout,), jnp.float32)   # BN weight
    beta = 0.1 * jax.random.normal(kb, (Cout,), jnp.float32)          # BN bias

    out = jax.block_until_ready(conv2d_transpose_batchnorm(x, w, gamma, beta, stride=stride))
    ref = jax.block_until_ready(_reference(x, w, gamma, beta, stride=stride))

    assert out.shape == (N, Cout, (H - 1) * stride + K, (W - 1) * stride + K), out.shape
    max_err = float(jnp.max(jnp.abs(out - ref)))
    assert max_err < 1e-3, f"mismatch vs reference, max abs err = {max_err}"
    print("KERNEL_OK")
</pallas_src>

<mosaic_0001>
module attributes {stable_mosaic.version = 11 : i64} {
  func.func @_stats_kernel(%arg0: i32, %arg1: memref<8x640xf32, #tpu.memory_space<vmem>>, %arg2: memref<8x128xf32, #tpu.memory_space<vmem>>, %arg3: memref<4x32x8xf32, #tpu.memory_space<vmem>>, %arg4: memref<1x32x2xf32, #tpu.memory_space<vmem>>) attributes {dimension_semantics = [#tpu.dimension_semantics<parallel>], iteration_bounds = array<i64: 1>, scalar_prefetch = 0 : i64, scratch_operands = 0 : i64, tpu.core_type = #tpu.core_type<tc>, window_params = [{transform_indices = @transform_0, window_bounds = array<i64: 8, 640>}, {transform_indices = @transform_1, window_bounds = array<i64: 8, 128>}, {pipeline_mode = #tpu.pipeline_mode<synchronous>, transform_indices = @transform_2, window_bounds = array<i64: 4, 32, 8>}, {transform_indices = @transform_3, window_bounds = array<i64: 1, 32, 2>}]} {
    %c0 = arith.constant 0 : index
    %c0_0 = arith.constant 0 : index
    %0 = vector.load %arg1[%c0, %c0_0] : memref<8x640xf32, #tpu.memory_space<vmem>>, vector<8x640xf32>
    %c0_1 = arith.constant 0 : index
    %c0_2 = arith.constant 0 : index
    %1 = vector.load %arg2[%c0_1, %c0_2] : memref<8x128xf32, #tpu.memory_space<vmem>>, vector<8x128xf32>
    %2 = tpu.concatenate %0, %1 in 1 : vector<8x640xf32>, vector<8x128xf32> -> vector<8x768xf32>
    %3 = vector.extract_strided_slice %2 {offsets = [0, 0], sizes = [8, 640], strides = [1, 1]} : vector<8x768xf32> to vector<8x640xf32>
    %c0_3 = arith.constant 0 : index
    %c0_4 = arith.constant 0 : index
    %c0_5 = arith.constant 0 : index
    %4 = vector.load %arg3[%c0_3, %c0_4, %c0_5] : memref<4x32x8xf32, #tpu.memory_space<vmem>>, vector<1x32x8xf32>
    %5 = vector.shape_cast %4 : vector<1x32x8xf32> to vector<32x8xf32>
    %cst = arith.constant dense<0.000000e+00> : vector<32x640xf32>
    %6 = tpu.matmul %5, %3, %cst {dimension_numbers = #tpu.dot_dimension_numbers<[1], [0], [0], [1], [0, 0, 1, 1], [], []>} : vector<32x8xf32>, vector<8x640xf32>, vector<32x640xf32> -> vector<32x640xf32>
    %c767_i32 = arith.constant 767 : i32
    %7 = tpu.dynamic_rotate %2 by %c767_i32 dim 1 : vector<8x768xf32>, i32 -> vector<8x768xf32>
    %8 = vector.extract_strided_slice %7 {offsets = [0, 0], sizes = [8, 640], strides = [1, 1]} : vector<8x768xf32> to vector<8x640xf32>
    %c1 = arith.constant 1 : index
    %c0_6 = arith.constant 0 : index
    %c0_7 = arith.constant 0 : index
    %9 = vector.load %arg3[%c1, %c0_6, %c0_7] : memref<4x32x8xf32, #tpu.memory_space<vmem>>, vector<1x32x8xf32>
    %10 = vector.shape_cast %9 : vector<1x32x8xf32> to vector<32x8xf32>
    %cst_8 = arith.constant dense<0.000000e+00> : vector<32x640xf32>
    %11 = tpu.matmul %10, %8, %cst_8 {dimension_numbers = #tpu.dot_dimension_numbers<[1], [0], [0], [1], [0, 0, 1, 1], [], []>} : vector<32x8xf32>, vector<8x640xf32>, vector<32x640xf32> -> vector<32x640xf32>
    %12 = arith.addf %6, %11 : vector<32x640xf32>
    %c751_i32 = arith.constant 751 : i32
    %13 = tpu.dynamic_rotate %2 by %c751_i32 dim 1 : vector<8x768xf32>, i32 -> vector<8x768xf32>
    %14 = vector.extract_strided_slice %13 {offsets = [0, 0], sizes = [8, 640], strides = [1, 1]} : vector<8x768xf32> to vector<8x640xf32>
    %c2 = arith.constant 2 : index
    %c0_9 = arith.constant 0 : index
    %c0_10 = arith.constant 0 : index
    %15 = vector.load %arg3[%c2, %c0_9, %c0_10] : memref<4x32x8xf32, #tpu.memory_space<vmem>>, vector<1x32x8xf32>
    %16 = vector.shape_cast %15 : vector<1x32x8xf32> to vector<32x8xf32>
    %cst_11 = arith.constant dense<0.000000e+00> : vector<32x640xf32>
    %17 = tpu.matmul %16, %14, %cst_11 {dimension_numbers = #tpu.dot_dimension_numbers<[1], [0], [0], [1], [0, 0, 1, 1], [], []>} : vector<32x8xf32>, vector<8x640xf32>, vector<32x640xf32> -> vector<32x640xf32>
    %18 = arith.addf %12, %17 : vector<32x640xf32>
    %c750_i32 = arith.constant 750 : i32
    %19 = tpu.dynamic_rotate %2 by %c750_i32 dim 1 : vector<8x768xf32>, i32 -> vector<8x768xf32>
    %20 = vector.extract_strided_slice %19 {offsets = [0, 0], sizes = [8, 640], strides = [1, 1]} : vector<8x768xf32> to vector<8x640xf32>
    %c3 = arith.constant 3 : index
    %c0_12 = arith.constant 0 : index
    %c0_13 = arith.constant 0 : index
    %21 = vector.load %arg3[%c3, %c0_12, %c0_13] : memref<4x32x8xf32, #tpu.memory_space<vmem>>, vector<1x32x8xf32>
    %22 = vector.shape_cast %21 : vector<1x32x8xf32> to vector<32x8xf32>
    %cst_14 = arith.constant dense<0.000000e+00> : vector<32x640xf32>
    %23 = tpu.matmul %22, %20, %cst_14 {dimension_numbers = #tpu.dot_dimension_numbers<[1], [0], [0], [1], [0, 0, 1, 1], [], []>} : vector<32x8xf32>, vector<8x640xf32>, vector<32x640xf32> -> vector<32x640xf32>
    %24 = arith.addf %18, %23 : vector<32x640xf32>
    %cst_15 = arith.constant dense<0.000000e+00> : vector<32xf32>
    %25 = vector.multi_reduction <add>, %24, %cst_15 [1] : vector<32x640xf32> to vector<32xf32>
    %26 = vector.shape_cast %25 : vector<32xf32> to vector<32x1xf32>
    %c0_16 = arith.constant 0 : index
    %c0_17 = arith.constant 0 : index
    %c0_18 = arith.constant 0 : index
    %27 = vector.load %arg4[%c0_16, %c0_17, %c0_18] : memref<1x32x2xf32, #tpu.memory_space<vmem>>, vector<1x32x1xf32>
    %28 = vector.shape_cast %27 : vector<1x32x1xf32> to vector<32x1xf32>
    %29 = vector.shape_cast %26 : vector<32x1xf32> to vector<1x32x1xf32>
    tpu.vector_store %arg4[%c0_16, %c0_17, %c0_18], %29 {strides = array<i32>} : memref<1x32x2xf32, #tpu.memory_space<vmem>>, vector<1x32x1xf32>,
    %30 = arith.mulf %24, %24 : vector<32x640xf32>
    %cst_19 = arith.constant dense<0.000000e+00> : vector<32xf32>
    %31 = vector.multi_reduction <add>, %30, %cst_19 [1] : vector<32x640xf32> to vector<32xf32>
    %32 = vector.shape_cast %31 : vector<32xf32> to vector<32x1xf32>
    %c0_20 = arith.constant 0 : index
    %c0_21 = arith.constant 0 : index
    %c1_22 = arith.constant 1 : index
    %33 = vector.load %arg4[%c0_20, %c0_21, %c1_22] : memref<1x32x2xf32, #tpu.memory_space<vmem>>, vector<1x32x1xf32>
    %34 = vector.shape_cast %33 : vector<1x32x1xf32> to vector<32x1xf32>
    %35 = vector.shape_cast %32 : vector<32x1xf32> to vector<1x32x1xf32>
    tpu.vector_store %arg4[%c0_20, %c0_21, %c1_22], %35 {strides = array<i32>} : memref<1x32x2xf32, #tpu.memory_space<vmem>>, vector<1x32x1xf32>,
    return
  }
  func.func @transform_0(%arg0: i32) -> (i32, i32) {
    %c0_i32 = arith.constant 0 : i32
    %c0_i32_0 = arith.constant 0 : i32
    return %c0_i32, %arg0 : i32, i32
  }
  func.func @transform_1(%arg0: i32) -> (i32, i32) {
    %c1_i32 = arith.constant 1 : i32
    %0 = arith.addi %arg0, %c1_i32 : i32
    %c5_i32 = arith.constant 5 : i32
    %1 = arith.muli %0, %c5_i32 : i32
    %c0_i32 = arith.constant 0 : i32
    %c0_i32_0 = arith.constant 0 : i32
    return %c0_i32, %1 : i32, i32
  }
  func.func @transform_2(%arg0: i32) -> (i32, i32, i32) {
    %c0_i32 = arith.constant 0 : i32
    %c0_i32_0 = arith.constant 0 : i32
    %c0_i32_1 = arith.constant 0 : i32
    %c0_i32_2 = arith.constant 0 : i32
    return %c0_i32, %c0_i32_0, %c0_i32_1 : i32, i32, i32
  }
  func.func @transform_3(%arg0: i32) -> (i32, i32, i32) {
    %c0_i32 = arith.constant 0 : i32
    %c0_i32_0 = arith.constant 0 : i32
    %c0_i32_1 = arith.constant 0 : i32
    return %arg0, %c0_i32, %c0_i32_0 : i32, i32, i32
  }
}

module attributes {stable_mosaic.version = 11 : i64} {
  func.func @_norm_kernel(%arg0: i32, %arg1: memref<8x640xf32, #tpu.memory_space<vmem>>, %arg2: memref<8x128xf32, #tpu.memory_space<vmem>>, %arg3: memref<4x32x8xf32, #tpu.memory_space<vmem>>, %arg4: memref<32x2xf32, #tpu.memory_space<vmem>>, %arg5: memref<32x640xf32, #tpu.memory_space<vmem>>) attributes {dimension_semantics = [#tpu.dimension_semantics<parallel>], iteration_bounds = array<i64: 1>, scalar_prefetch = 0 : i64, scratch_operands = 0 : i64, tpu.core_type = #tpu.core_type<tc>, window_params = [{transform_indices = @transform_0, window_bounds = array<i64: 8, 640>}, {transform_indices = @transform_1, window_bounds = array<i64: 8, 128>}, {pipeline_mode = #tpu.pipeline_mode<synchronous>, transform_indices = @transform_2, window_bounds = array<i64: 4, 32, 8>}, {pipeline_mode = #tpu.pipeline_mode<synchronous>, transform_indices = @transform_3, window_bounds = array<i64: 32, 2>}, {transform_indices = @transform_4, window_bounds = array<i64: 32, 640>}]} {
    %c0 = arith.constant 0 : index
    %c0_0 = arith.constant 0 : index
    %0 = vector.load %arg1[%c0, %c0_0] : memref<8x640xf32, #tpu.memory_space<vmem>>, vector<8x640xf32>
    %c0_1 = arith.constant 0 : index
    %c0_2 = arith.constant 0 : index
    %1 = vector.load %arg2[%c0_1, %c0_2] : memref<8x128xf32, #tpu.memory_space<vmem>>, vector<8x128xf32>
    %2 = tpu.concatenate %0, %1 in 1 : vector<8x640xf32>, vector<8x128xf32> -> vector<8x768xf32>
    %3 = vector.extract_strided_slice %2 {offsets = [0, 0], sizes = [8, 640], strides = [1, 1]} : vector<8x768xf32> to vector<8x640xf32>
    %c0_3 = arith.constant 0 : index
    %c0_4 = arith.constant 0 : index
    %c0_5 = arith.constant 0 : index
    %4 = vector.load %arg3[%c0_3, %c0_4, %c0_5] : memref<4x32x8xf32, #tpu.memory_space<vmem>>, vector<1x32x8xf32>
    %5 = vector.shape_cast %4 : vector<1x32x8xf32> to vector<32x8xf32>
    %cst = arith.constant dense<0.000000e+00> : vector<32x640xf32>
    %6 = tpu.matmul %5, %3, %cst {dimension_numbers = #tpu.dot_dimension_numbers<[1], [0], [0], [1], [0, 0, 1, 1], [], []>} : vector<32x8xf32>, vector<8x640xf32>, vector<32x640xf32> -> vector<32x640xf32>
    %c767_i32 = arith.constant 767 : i32
    %7 = tpu.dynamic_rotate %2 by %c767_i32 dim 1 : vector<8x768xf32>, i32 -> vector<8x768xf32>
    %8 = vector.extract_strided_slice %7 {offsets = [0, 0], sizes = [8, 640], strides = [1, 1]} : vector<8x768xf32> to vector<8x640xf32>
    %c1 = arith.constant 1 : index
    %c0_6 = arith.constant 0 : index
    %c0_7 = arith.constant 0 : index
    %9 = vector.load %arg3[%c1, %c0_6, %c0_7] : memref<4x32x8xf32, #tpu.memory_space<vmem>>, vector<1x32x8xf32>
    %10 = vector.shape_cast %9 : vector<1x32x8xf32> to vector<32x8xf32>
    %cst_8 = arith.constant dense<0.000000e+00> : vector<32x640xf32>
    %11 = tpu.matmul %10, %8, %cst_8 {dimension_numbers = #tpu.dot_dimension_numbers<[1], [0], [0], [1], [0, 0, 1, 1], [], []>} : vector<32x8xf32>, vector<8x640xf32>, vector<32x640xf32> -> vector<32x640xf32>
    %12 = arith.addf %6, %11 : vector<32x640xf32>
    %c751_i32 = arith.constant 751 : i32
    %13 = tpu.dynamic_rotate %2 by %c751_i32 dim 1 : vector<8x768xf32>, i32 -> vector<8x768xf32>
    %14 = vector.extract_strided_slice %13 {offsets = [0, 0], sizes = [8, 640], strides = [1, 1]} : vector<8x768xf32> to vector<8x640xf32>
    %c2 = arith.constant 2 : index
    %c0_9 = arith.constant 0 : index
    %c0_10 = arith.constant 0 : index
    %15 = vector.load %arg3[%c2, %c0_9, %c0_10] : memref<4x32x8xf32, #tpu.memory_space<vmem>>, vector<1x32x8xf32>
    %16 = vector.shape_cast %15 : vector<1x32x8xf32> to vector<32x8xf32>
    %cst_11 = arith.constant dense<0.000000e+00> : vector<32x640xf32>
    %17 = tpu.matmul %16, %14, %cst_11 {dimension_numbers = #tpu.dot_dimension_numbers<[1], [0], [0], [1], [0, 0, 1, 1], [], []>} : vector<32x8xf32>, vector<8x640xf32>, vector<32x640xf32> -> vector<32x640xf32>
    %18 = arith.addf %12, %17 : vector<32x640xf32>
    %c750_i32 = arith.constant 750 : i32
    %19 = tpu.dynamic_rotate %2 by %c750_i32 dim 1 : vector<8x768xf32>, i32 -> vector<8x768xf32>
    %20 = vector.extract_strided_slice %19 {offsets = [0, 0], sizes = [8, 640], strides = [1, 1]} : vector<8x768xf32> to vector<8x640xf32>
    %c3 = arith.constant 3 : index
    %c0_12 = arith.constant 0 : index
    %c0_13 = arith.constant 0 : index
    %21 = vector.load %arg3[%c3, %c0_12, %c0_13] : memref<4x32x8xf32, #tpu.memory_space<vmem>>, vector<1x32x8xf32>
    %22 = vector.shape_cast %21 : vector<1x32x8xf32> to vector<32x8xf32>
    %cst_14 = arith.constant dense<0.000000e+00> : vector<32x640xf32>
    %23 = tpu.matmul %22, %20, %cst_14 {dimension_numbers = #tpu.dot_dimension_numbers<[1], [0], [0], [1], [0, 0, 1, 1], [], []>} : vector<32x8xf32>, vector<8x640xf32>, vector<32x640xf32> -> vector<32x640xf32>
    %24 = arith.addf %18, %23 : vector<32x640xf32>
    %c0_15 = arith.constant 0 : index
    %c0_16 = arith.constant 0 : index
    %25 = vector.load %arg4[%c0_15, %c0_16] : memref<32x2xf32, #tpu.memory_space<vmem>>, vector<32x1xf32>
    %26 = vector.broadcast %25 : vector<32x1xf32> to vector<32x640xf32>
    %27 = arith.mulf %24, %26 : vector<32x640xf32>
    %c0_17 = arith.constant 0 : index
    %c1_18 = arith.constant 1 : index
    %28 = vector.load %arg4[%c0_17, %c1_18] : memref<32x2xf32, #tpu.memory_space<vmem>>, vector<32x1xf32>
    %29 = vector.broadcast %28 : vector<32x1xf32> to vector<32x640xf32>
    %30 = arith.addf %27, %29 : vector<32x640xf32>
    %c0_19 = arith.constant 0 : index
    %c0_20 = arith.constant 0 : index
    %31 = vector.load %arg5[%c0_19, %c0_20] : memref<32x640xf32, #tpu.memory_space<vmem>>, vector<32x640xf32>
    tpu.vector_store %arg5[%c0_19, %c0_20], %30 {strides = array<i32>} : memref<32x640xf32, #tpu.memory_space<vmem>>, vector<32x640xf32>,
    return
  }
  func.func @transform_0(%arg0: i32) -> (i32, i32) {
    %c0_i32 = arith.constant 0 : i32
    %c0_i32_0 = arith.constant 0 : i32
    return %c0_i32, %arg0 : i32, i32
  }
  func.func @transform_1(%arg0: i32) -> (i32, i32) {
    %c1_i32 = arith.constant 1 : i32
    %0 = arith.addi %arg0, %c1_i32 : i32
    %c5_i32 = arith.constant 5 : i32
    %1 = arith.muli %0, %c5_i32 : i32
    %c0_i32 = arith.constant 0 : i32
    %c0_i32_0 = arith.constant 0 : i32
    return %c0_i32, %1 : i32, i32
  }
  func.func @transform_2(%arg0: i32) -> (i32, i32, i32) {
    %c0_i32 = arith.constant 0 : i32
    %c0_i32_0 = arith.constant 0 : i32
    %c0_i32_1 = arith.constant 0 : i32
    %c0_i32_2 = arith.constant 0 : i32
    return %c0_i32, %c0_i32_0, %c0_i32_1 : i32, i32, i32
  }
  func.func @transform_3(%arg0: i32) -> (i32, i32) {
    %c0_i32 = arith.constant 0 : i32
    %c0_i32_0 = arith.constant 0 : i32
    %c0_i32_1 = arith.constant 0 : i32
    return %c0_i32, %c0_i32_0 : i32, i32
  }
  func.func @transform_4(%arg0: i32) -> (i32, i32) {
    %c0_i32 = arith.constant 0 : i32
    %c0_i32_0 = arith.constant 0 : i32
    return %c0_i32, %arg0 : i32, i32
  }
}

</mosaic_0001>

<bundles_post_ra>
// kernel: conv2d_transpose_batchnorm.3
= control target key start
LH: loop header
LB: loop body
LE: loop exit
PB: predicated region body
PF: predicated region fallthrough
CT: control target
= control target key end

     0   :  { %vm74_vm0 = vcmask 64512   ;;  %v1554_v2 = vmov 0.0   ;;  %s1555_s19 = smov 127   ;;  %s1556_s29 = smov 111   ;;  %v1558_v8 = vmov 0   ;;  %v1559_v13 = vmov 1   ;;  %s1891_s0 = inlined_call_operand.vmem [shape: f32[8,768], index: 0, kind: input, shape index: {}, may-alias: {0,1}]   ;;  %s1892_s1 = inlined_call_operand.vmem [shape: f32[8,768], index: 1, kind: input, shape index: {}, may-alias: {0,1}]   ;;  %s1893_s2 = inlined_call_operand.vmem [shape: f32[4,32,8], index: 2, kind: input, shape index: {}]   ;;  %s1894_s3 = inlined_call_operand.vmem [shape: f32[32,2], index: 3, kind: input, shape index: {}]   ;;  %s1895_s4 = inlined_call_operand.vmem [shape: f32[32,640], index: 4, kind: output, shape index: {}]  }
   0x1   :  { %v1588_v0 = vld [vmem:[%s1891_s0 + $0x20] sm:$0xff]  ;;  %v1593_v1 = vld [vmem:[%s1891_s0 + $0x8] sm:$0xff]  ;;  %151 = vmatprep.mubr.f32.mxu1 %v1554_v2  ;;  %v1604_v4 = vld [vmem:[%s1891_s0 + $0x10] sm:$0xff]  ;;  %s1557_s30 = smov 110   ;;  %1551 = vset.pattern.permute.xlu1 %v1558_v8  ;;  %v61_v14 = vlaneseq }
   0x2   :  { %57 = vrot.lane.b32.xlu1 %v1588_v0, %s1555_s19  ;;  %51 = vrot.lane.b32.xlu0 %v1593_v1, %s1555_s19  ;;  %v1371_v3 = vld [vmem:[%s1892_s1 + $0x28] sm:$0xff]  ;;  %v1609_v5 = vld [vmem:[%s1893_s2 + $0x20] sm:$0xff] }
   0x3   :  { %1454 = vmatprep.mubr.msk.f32.mxu0 %vm74_vm0, %v1609_v5  ;;  %v1617_v6 = vld [vmem:[%s1891_s0 + $0x18] sm:$0xff]  ;;  %v39_v7 = vld [vmem:[%s1891_s0] sm:$0xff]  ;;  %v1262_v9 = vld [vmem:[%s1894_s3 + $0x8] sm:$0xff]  ;;  %1550 = vset.pattern.permute.xlu0 %v1558_v8  ;;  %v1643_v15 = vand.u32 127, %v61_v14 }
   0x4   :  { %v1261_v10 = vld [vmem:[%s1894_s3] sm:$0xff]  ;;  %v1263_v11 = vld [vmem:[%s1894_s3 + $0x10] sm:$0xff]  ;;  %v1264_v12 = vld [vmem:[%s1894_s3 + $0x18] sm:$0xff] }
   0x5   :  { %vm63_vm1 = vcmp.lt.s32.totalorder %v1643_v15, 127  ;;  %v1373_v22 = vld [vmem:[%s1893_s2 + $0x28] sm:$0xff]  ;;  %v1656_v23 = vld [vmem:[%s1893_s2 + $0x30] sm:$0xff]  ;;  %v1375_v28 = vld [vmem:[%s1893_s2 + $0x38] sm:$0xff]  ;;  %vm637_vm2 = vcmp.lt.s32.totalorder %v1643_v15, 111  ;;  %vm955_vm3 = vcmp.lt.s32.totalorder %v1643_v15, 110 }
   0x6   :  { %59 = vrot.lane.b32.xlu1 %v1371_v3, %s1555_s19  ;;  %53 = vrot.lane.b32.xlu0 %v1604_v4, %s1555_s19  ;;  %v45_v32 = vld [vmem:[%s1893_s2] sm:$0xff]  ;;  %v46_v34 = vld [vmem:[%s1893_s2 + $0x8] sm:$0xff] }
   0x7   :  { %v47_v36 = vld [vmem:[%s1893_s2 + $0x10] sm:$0xff]  ;;  %v48_v39 = vld [vmem:[%s1893_s2 + $0x18] sm:$0xff]  ;;  %v1400_v47 = vld [vmem:[%s1893_s2 + $0x40] sm:$0xff] }
   0x8   :  { %v1401_v51 = vld [vmem:[%s1893_s2 + $0x48] sm:$0xff]  ;;  %v1402_v54 = vld [vmem:[%s1893_s2 + $0x50] sm:$0xff]  ;;  %v1403_v55 = vld [vmem:[%s1893_s2 + $0x58] sm:$0xff] }
   0x9   :  { %v1416_v60 = vld [vmem:[%s1893_s2 + $0x60] sm:$0xff]  ;;  %v1417_v61 = vld [vmem:[%s1893_s2 + $0x68] sm:$0xff]  ;;  %v1418_v62 = vld [vmem:[%s1893_s2 + $0x70] sm:$0xff] }
   0xa   :  { %55 = vrot.lane.b32.xlu1 %v1617_v6, %s1555_s19  ;;  %49 = vrot.lane.b32.xlu0 %v39_v7, %s1555_s19  ;;  %v1419_v63 = vld [vmem:[%s1893_s2 + $0x78] sm:$0xff] }
   0xe   :  { %627 = vrot.lane.b32.xlu0 %v1593_v1, %s1556_s29  ;;  %629 = vrot.lane.b32.xlu1 %v1604_v4, %s1556_s29 }
  0x12   :  { %625 = vrot.lane.b32.xlu0 %v39_v7, %s1556_s29  ;;  %631 = vrot.lane.b32.xlu1 %v1617_v6, %s1556_s29 }
  0x16   :  { %633 = vrot.lane.b32.xlu0 %v1588_v0, %s1556_s29  ;;  %635 = vrot.lane.b32.xlu1 %v1371_v3, %s1556_s29 }
  0x1a   :  { %945 = vrot.lane.b32.xlu0 %v1593_v1, %s1557_s30  ;;  %947 = vrot.lane.b32.xlu1 %v1604_v4, %s1557_s30 }
  0x1e   :  { %943 = vrot.lane.b32.xlu0 %v39_v7, %s1557_s30  ;;  %949 = vrot.lane.b32.xlu1 %v1617_v6, %s1557_s30 }
  0x22   :  { %951 = vrot.lane.b32.xlu0 %v1588_v0, %s1557_s30  ;;  %953 = vrot.lane.b32.xlu1 %v1371_v3, %s1557_s30 }
  0x26   :  { %1272 = vperm.xlu1 %1551, %v1262_v9   ;;  %1267 = vperm.xlu0 %1550, %v1261_v10  }
  0x2a   :  { %1277 = vperm.xlu1 %1551, %v1263_v11   ;;  %1282 = vperm.xlu0 %1550, %v1264_v12  }
  0x2e   :  { %1552 = vset.pattern.permute.xlu1 %v1559_v13  ;;  %1553 = vset.pattern.permute.xlu0 %v1559_v13 }
  0x2f   :  { %1306 = vperm.xlu1 %1552, %v1261_v10   ;;  %1310 = vperm.xlu0 %1553, %v1262_v9  }
  0x33   :  { %1314 = vperm.xlu1 %1552, %v1263_v11  }
  0x37   :  { %1318 = vperm.xlu1 %1552, %v1264_v12  }
  0x74   :  { %v58_v16 = vpop.permute.xlu1 %57  ;;  %v52_v17 = vpop.permute.xlu0 %51 }
  0x78   :  { %v60_v18 = vpop.permute.xlu1 %59  ;;  %v54_v19 = vpop.permute.xlu0 %53 }
  0x79   :  { %v67_v20 = vsel %vm63_vm1, %v52_v17, %v54_v19  ;;  %v64_v21 = vsel %vm63_vm1, %v58_v16, %v60_v18 }
  0x7a   :  { %87 = vmatprep.subr.mxu1 %v67_v20  ;;  %1452 = vmatprep.subr.mxu0 %v64_v21 }
  0x7b   :  { %1453 = vmatpush3.msra.mxu0 %v64_v21 }
  0x7c   :  { %1455 = vmatmul.mubr.msk.f32.vlgmr.msra.gmra.mrb[0].mxu0 %vm74_vm0, %v1373_v22  ;;  %v56_v24 = vpop.permute.xlu1 %55  ;;  %v50_v25 = vpop.permute.xlu0 %49  ;;  %362 = vmatprep.subr.mxu0 %v1593_v1 }
  0x7d   :  { %v68_v26 = vsel %vm63_vm1, %v50_v25, %v52_v17  ;;  %v65_v27 = vsel %vm63_vm1, %v56_v24, %v58_v16  ;;  %1457 = vmatprep.mubr.msk.f32.mxu0 %vm74_vm0, %v1656_v23  ;;  %363 = vmatpush1.msra.mxu0 %v39_v7  ;;  %v66_v29 = vsel %vm63_vm1, %v54_v19, %v56_v24 }
  0x7e   :  { %88 = vmatpush1.msra.mxu1 %v68_v26  ;;  %1460 = vmatprep.subr.mxu0 %v1588_v0 }
  0x7f   :  { %1376 = vmatmul.mubr.msk.f32.vlgmr.msra.gmra.mrb[0].mxu1 %vm74_vm0, %v1609_v5  ;;  %176 = vmatprep.subr.mxu1 %v65_v27 }
  0x80   :  { %177 = vmatpush1.msra.mxu1 %v66_v29  ;;  %1458 = vmatmul.mubr.msk.f32.gmra.mrb[2].mxu0 %vm74_vm0, %v1375_v28  ;;  %v628_v30 = vpop.permute.xlu0 %627  ;;  %v1675_v31 = vpop.permute.xlu1 %629 }
  0x81   :  { %157 = vmatprep.mubr.f32.mxu1 %v1554_v2  ;;  %426 = vmatprep.mubr.f32.mxu0 %v1554_v2  ;;  %v641_v33 = vsel %vm637_vm2, %v628_v30, %v1675_v31 }
  0x82   :  { %451 = vmatprep.subr.mxu1 %v1617_v6 }
  0x83   :  { %1377 = vmatmul.mubr.msk.f32.gmra.mrb[2].mxu1 %vm74_vm0, %v1373_v22 }
  0x84   :  { %1388 = vmatmul.mubr.msk.f32.vlgmr.msra.gmra.mrb[4].mxu0 %vm74_vm0, %v45_v32  ;;  %163 = vmatprep.mubr.f32.mxu1 %v1554_v2  ;;  %v626_v35 = vpop.permute.xlu0 %625  ;;  %v632_v37 = vpop.permute.xlu1 %631 }
  0x85   :  { %432 = vmatprep.mubr.f32.mxu0 %v1554_v2  ;;  %1461 = vmatpush3.msra.mxu0 %v1588_v0  ;;  %v642_v43 = vsel %vm637_vm2, %v626_v35, %v628_v30  ;;  %v640_v52 = vsel %vm637_vm2, %v1675_v31, %v632_v37 }
  0x86   :  { %660 = vmatprep.subr.mxu0 %v641_v33 }
  0x87   :  { %1378 = vmatmul.mubr.msk.f32.gmra.mrb[4].mxu1 %vm74_vm0, %v1656_v23 }
  0x88   :  { %1389 = vmatmul.mubr.msk.f32.gmra.mrb[6].mxu0 %vm74_vm0, %v46_v34  ;;  %169 = vmatprep.mubr.f32.mxu1 %v1554_v2  ;;  %v634_v38 = vpop.permute.xlu0 %633  ;;  %v636_v41 = vpop.permute.xlu1 %635 }
  0x89   :  { %438 = vmatprep.mubr.f32.mxu0 %v1554_v2  ;;  %v639_v40 = vsel %vm637_vm2, %v632_v37, %v634_v38  ;;  %v638_v44 = vsel %vm637_vm2, %v634_v38, %v636_v41 }
  0x8b   :  { %1379 = vmatmul.mubr.msk.f32.gmra.mrb[6].mxu1 %vm74_vm0, %v1375_v28 }
  0x8c   :  { %1390 = vmatmul.mubr.msk.f32.gmra.mrb[8].mxu0 %vm74_vm0, %v47_v36  ;;  %240 = vmatprep.mubr.f32.mxu1 %v1554_v2  ;;  %v946_v42 = vpop.permute.xlu0 %945  ;;  %v948_v45 = vpop.permute.xlu1 %947 }
  0x8d   :  { %444 = vmatprep.mubr.f32.mxu0 %v1554_v2  ;;  %v959_v48 = vsel %vm955_vm3, %v946_v42, %v948_v45 }
  0x8f   :  { %1380 = vmatmul.mubr.msk.f32.vlgmr.msra.gmra.mrb[8].mxu1 %vm74_vm0, %v1609_v5 }
  0x90   :  { %1391 = vmatmul.mubr.msk.f32.gmra.mrb[10].mxu0 %vm74_vm0, %v48_v39  ;;  %452 = vmatpush1.msra.mxu1 %v1604_v4  ;;  %v944_v46 = vpop.permute.xlu0 %943  ;;  %v950_v49 = vpop.permute.xlu1 %949 }
  0x91   :  { %246 = vmatprep.mubr.f32.mxu1 %v1554_v2  ;;  %1462 = vmatprep.mubr.msk.f32.mxu0 %vm74_vm0, %v45_v32  ;;  %v960_v57 = vsel %vm955_vm3, %v944_v46, %v946_v42  ;;  %v958_v59 = vsel %vm955_vm3, %v948_v45, %v950_v49 }
  0x92   :  { %749 = vmatprep.subr.mxu1 %v639_v40 }
  0x93   :  { %1381 = vmatmul.mubr.msk.f32.gmra.mrb[10].mxu1 %vm74_vm0, %v1373_v22 }
  0x94   :  { %1463 = vmatmul.mubr.msk.f32.vlgmr.msra.gmra.mrb[0].mxu0 %vm74_vm0, %v46_v34  ;;  %252 = vmatprep.mubr.f32.mxu1 %v1554_v2  ;;  %v952_v50 = vpop.permute.xlu0 %951  ;;  %v954_v56 = vpop.permute.xlu1 %953 }
  0x95   :  { %661 = vmatpush1.msra.mxu0 %v642_v43  ;;  %1465 = vmatprep.mubr.msk.f32.mxu0 %vm74_vm0, %v47_v36  ;;  %v957_v53 = vsel %vm955_vm3, %v950_v49, %v952_v50  ;;  %v956_v58 = vsel %vm955_vm3, %v952_v50, %v954_v56 }
  0x96   :  { %1468 = vmatprep.subr.mxu0 %v638_v44 }
  0x97   :  { %1382 = vmatmul.mubr.msk.f32.gmra.mrb[12].mxu1 %vm74_vm0, %v1656_v23 }
  0x98   :  { %1466 = vmatmul.mubr.msk.f32.gmra.mrb[2].mxu0 %vm74_vm0, %v48_v39  ;;  %258 = vmatprep.mubr.f32.mxu1 %v1554_v2 }
  0x99   :  { %724 = vmatprep.mubr.f32.mxu0 %v1554_v2 }
  0x9b   :  { %1383 = vmatmul.mubr.msk.f32.gmra.mrb[14].mxu1 %vm74_vm0, %v1375_v28 }
  0x9c   :  { %1404 = vmatmul.mubr.msk.f32.vlgmr.msra.gmra.mrb[4].mxu0 %vm74_vm0, %v1400_v47  ;;  %515 = vmatprep.mubr.f32.mxu1 %v1554_v2 }
  0x9d   :  { %730 = vmatprep.mubr.f32.mxu0 %v1554_v2  ;;  %1469 = vmatpush3.msra.mxu0 %v638_v44 }
  0x9e   :  { %978 = vmatprep.subr.mxu0 %v959_v48 }
  0x9f   :  { %1392 = vmatmul.mubr.msk.f32.vlgmr.msra.gmra.mrb[8].mxu1 %vm74_vm0, %v45_v32 }
  0xa0   :  { %750 = vmatpush1.msra.mxu1 %v640_v52  ;;  %1405 = vmatmul.mubr.msk.f32.gmra.mrb[6].mxu0 %vm74_vm0, %v1401_v51 }
  0xa1   :  { %521 = vmatprep.mubr.f32.mxu1 %v1554_v2  ;;  %736 = vmatprep.mubr.f32.mxu0 %v1554_v2 }
  0xa2   :  { %1067 = vmatprep.subr.mxu1 %v957_v53 }
  0xa3   :  { %1393 = vmatmul.mubr.msk.f32.gmra.mrb[10].mxu1 %vm74_vm0, %v46_v34 }
  0xa4   :  { %1406 = vmatmul.mubr.msk.f32.gmra.mrb[8].mxu0 %vm74_vm0, %v1402_v54  ;;  %527 = vmatprep.mubr.f32.mxu1 %v1554_v2 }
  0xa5   :  { %742 = vmatprep.mubr.f32.mxu0 %v1554_v2  ;;  %v1273_v9 = vpop.permute.xlu1 %1272  ;;  %v1268_v10 = vpop.permute.xlu0 %1267 }
  0xa7   :  { %1394 = vmatmul.mubr.msk.f32.gmra.mrb[12].mxu1 %vm74_vm0, %v47_v36 }
  0xa8   :  { %1407 = vmatmul.mubr.msk.f32.gmra.mrb[10].mxu0 %vm74_vm0, %v1403_v55  ;;  %533 = vmatprep.mubr.f32.mxu1 %v1554_v2 }
  0xa9   :  { %1470 = vmatprep.mubr.msk.f32.mxu0 %vm74_vm0, %v1400_v47  ;;  %v1817_v11 = vpop.permute.xlu1 %1277  ;;  %v1819_v13 = vpop.permute.xlu0 %1282 }
  0xab   :  { %1395 = vmatmul.mubr.msk.f32.gmra.mrb[14].mxu1 %vm74_vm0, %v48_v39 }
  0xac   :  { %1471 = vmatmul.mubr.msk.f32.vlgmr.msra.gmra.mrb[0].mxu0 %vm74_vm0, %v1401_v51  ;;  %813 = vmatprep.mubr.f32.mxu1 %v1554_v2 }
  0xad   :  { %979 = vmatpush1.msra.mxu0 %v960_v57  ;;  %1473 = vmatprep.mubr.msk.f32.mxu0 %vm74_vm0, %v1402_v54 }
  0xae   :  { %1476 = vmatprep.subr.mxu0 %v956_v58  ;;  %v1307_v16 = vpop.permute.xlu1 %1306  ;;  %v1311_v25 = vpop.permute.xlu0 %1310 }
  0xaf   :  { %1408 = vmatmul.mubr.msk.f32.vlgmr.msra.gmra.mrb[8].mxu1 %vm74_vm0, %v1400_v47 }
  0xb0   :  { %1068 = vmatpush1.msra.mxu1 %v958_v59  ;;  %1474 = vmatmul.mubr.msk.f32.gmra.mrb[2].mxu0 %vm74_vm0, %v1403_v55 }
  0xb1   :  { %819 = vmatprep.mubr.f32.mxu1 %v1554_v2  ;;  %1042 = vmatprep.mubr.f32.mxu0 %v1554_v2 }
  0xb2   :  { %v1315_v29 = vpop.permute.xlu1 %1314 }
  0xb3   :  { %1409 = vmatmul.mubr.msk.f32.gmra.mrb[10].mxu1 %vm74_vm0, %v1401_v51 }
  0xb4   :  { %1420 = vmatmul.mubr.msk.f32.vlgmr.msra.gmra.mrb[4].mxu0 %vm74_vm0, %v1416_v60  ;;  %825 = vmatprep.mubr.f32.mxu1 %v1554_v2 }
  0xb5   :  { %1477 = vmatpush3.msra.mxu0 %v956_v58  ;;  %1048 = vmatprep.mubr.f32.mxu0 %v1554_v2 }
  0xb6   :  { %v1319_v48 = vpop.permute.xlu1 %1318 }
  0xb7   :  { %1410 = vmatmul.mubr.msk.f32.gmra.mrb[12].mxu1 %vm74_vm0, %v1402_v54 }
  0xb8   :  { %1421 = vmatmul.mubr.msk.f32.gmra.mrb[6].mxu0 %vm74_vm0, %v1417_v61  ;;  %831 = vmatprep.mubr.f32.mxu1 %v1554_v2 }
  0xb9   :  { %1054 = vmatprep.mubr.f32.mxu0 %v1554_v2 }
  0xbb   :  { %1411 = vmatmul.mubr.msk.f32.gmra.mrb[14].mxu1 %vm74_vm0, %v1403_v55 }
  0xbc   :  { %1422 = vmatmul.mubr.msk.f32.gmra.mrb[8].mxu0 %vm74_vm0, %v1418_v62  ;;  %1131 = vmatprep.mubr.f32.mxu1 %v1554_v2 }
  0xbd   :  { %1060 = vmatprep.mubr.f32.mxu0 %v1554_v2 }
  0xbf   :  { %1424 = vmatmul.mubr.msk.f32.vlgmr.msra.gmra.mrb[8].mxu1 %vm74_vm0, %v1416_v60 }
  0xc0   :  { %1423 = vmatmul.mubr.msk.f32.gmra.mrb[10].mxu0 %vm74_vm0, %v1419_v63  ;;  %1137 = vmatprep.mubr.f32.mxu1 %v1554_v2 }
  0xc1   :  { %1478 = vmatprep.mubr.msk.f32.mxu0 %vm74_vm0, %v1416_v60 }
  0xc3   :  { %1425 = vmatmul.mubr.msk.f32.gmra.mrb[10].mxu1 %vm74_vm0, %v1417_v61 }
  0xc4   :  { %1479 = vmatmul.mubr.msk.f32.vlgmr.msra.gmra.mrb[0].mxu0 %vm74_vm0, %v1417_v61  ;;  %1143 = vmatprep.mubr.f32.mxu1 %v1554_v2 }
  0xc5   :  { %1481 = vmatprep.mubr.msk.f32.mxu0 %vm74_vm0, %v1418_v62 }
  0xc7   :  { %1426 = vmatmul.mubr.msk.f32.gmra.mrb[12].mxu1 %vm74_vm0, %v1418_v62 }
  0xc8   :  { %1482 = vmatmul.mubr.msk.f32.gmra.mrb[2].mxu0 %vm74_vm0, %v1419_v63  ;;  %1149 = vmatprep.mubr.f32.mxu1 %v1554_v2 }
  0xcb   :  { %1427 = vmatmul.mubr.msk.f32.gmra.mrb[14].mxu1 %vm74_vm0, %v1419_v63 }
 0x152   :  { %v153_v0 = vpop.f32.mrb[0].mxu1 }
 0x153   :  { %v155_v1 = vpop.f32.mrb[1].mxu1 }
 0x156   :  { %v159_v3 = vpop.f32.mrb[2].mxu1 }
 0x157   :  { %v161_v4 = vpop.f32.mrb[3].mxu1 }
 0x15a   :  { %v165_v5 = vpop.f32.mrb[4].mxu1 }
 0x15b   :  { %v167_v6 = vpop.f32.mrb[5].mxu1 }
 0x15e   :  { %v171_v7 = vpop.f32.mrb[6].mxu1 }
 0x15f   :  { %v173_v8 = vpop.f32.mrb[7].mxu1 }
 0x187   :  { %v1044_v12 = vpop.f32.mrb[4].mxu0 }
 0x188   :  { %v1484_v14 = vadd.f32 %v1044_v12, %v153_v0  ;;  %v1046_v15 = vpop.f32.mrb[5].mxu0 }
 0x189   :  { %v1485_v2 = vadd.f32 %v1046_v15, %v155_v1 }
 0x18a   :  { %v1285_v17 = vmul.f32 %v1484_v14, %v1268_v10 }
 0x18b   :  { %v1286_v18 = vmul.f32 %v1485_v2, %v1268_v10  ;;  %v1050_v19 = vpop.f32.mrb[6].mxu0 }
 0x18c   :  { %v1321_v20 = vadd.f32 %v1307_v16, %v1285_v17  ;;  %v1486_v21 = vadd.f32 %v1050_v19, %v159_v3  ;;  %v1052_v22 = vpop.f32.mrb[7].mxu0 }
 0x18d   :  { %v1322_v23 = vadd.f32 %v1307_v16, %v1286_v18  ;;  %v1487_v24 = vadd.f32 %v1052_v22, %v161_v4 }
 0x18e   :  { %1341 = vst [vmem:[%s1895_s4] sm:$0xff] %v1321_v20  ;;  %v1290_v26 = vmul.f32 %v1486_v21, %v1273_v9 }
 0x18f   :  { %1342 = vst [vmem:[%s1895_s4 + $0x8] sm:$0xff] %v1322_v23  ;;  %v1291_v27 = vmul.f32 %v1487_v24, %v1273_v9  ;;  %v1056_v28 = vpop.f32.mrb[8].mxu0 }
 0x190   :  { %v1326_v30 = vadd.f32 %v1311_v25, %v1290_v26  ;;  %v1488_v31 = vadd.f32 %v1056_v28, %v165_v5  ;;  %v1058_v32 = vpop.f32.mrb[9].mxu0 }
 0x191   :  { %v1327_v33 = vadd.f32 %v1311_v25, %v1291_v27  ;;  %v1489_v34 = vadd.f32 %v1058_v32, %v167_v6 }
 0x192   :  { %1346 = vst [vmem:[%s1895_s4 + $0x28] sm:$0xff] %v1326_v30  ;;  %v1295_v35 = vmul.f32 %v1488_v31, %v1817_v11  ;;  %v1133_v36 = vpop.f32.mrb[8].mxu1 }
 0x193   :  { %1347 = vst [vmem:[%s1895_s4 + $0x30] sm:$0xff] %v1327_v33  ;;  %v1296_v37 = vmul.f32 %v1489_v34, %v1817_v11  ;;  %v1287_v38 = vmul.f32 %v1268_v10, %v1133_v36  ;;  %v1062_v39 = vpop.f32.mrb[10].mxu0  ;;  %v1135_v40 = vpop.f32.mrb[9].mxu1 }
 0x194   :  { %v1331_v41 = vadd.f32 %v1315_v29, %v1295_v35  ;;  %v1490_v42 = vadd.f32 %v1062_v39, %v171_v7  ;;  %v1288_v43 = vmul.f32 %v1268_v10, %v1135_v40  ;;  %v1064_v44 = vpop.f32.mrb[11].mxu0 }
 0x195   :  { %v1323_v45 = vadd.f32 %v1307_v16, %v1287_v38  ;;  %v1332_v46 = vadd.f32 %v1315_v29, %v1296_v37  ;;  %v1491_v47 = vadd.f32 %v1064_v44, %v173_v8 }
 0x196   :  { %1351 = vst [vmem:[%s1895_s4 + $0x50] sm:$0xff] %v1331_v41  ;;  %v1300_v49 = vmul.f32 %v1490_v42, %v1819_v13  ;;  %v1324_v50 = vadd.f32 %v1307_v16, %v1288_v43  ;;  %v1139_v51 = vpop.f32.mrb[10].mxu1 }
 0x197   :  { %1343 = vst [vmem:[%s1895_s4 + $0x10] sm:$0xff] %v1323_v45  ;;  %1352 = vst [vmem:[%s1895_s4 + $0x58] sm:$0xff] %v1332_v46  ;;  %v1301_v52 = vmul.f32 %v1491_v47, %v1819_v13  ;;  %v1292_v53 = vmul.f32 %v1273_v9, %v1139_v51  ;;  %v1141_v54 = vpop.f32.mrb[11].mxu1  ;;  %v1480_v55 = vpop.f32.mrb[0].mxu0 }
 0x198   :  { %1344 = vst [vmem:[%s1895_s4 + $0x18] sm:$0xff] %v1324_v50  ;;  %v1336_v56 = vadd.f32 %v1319_v48, %v1300_v49  ;;  %v1293_v57 = vmul.f32 %v1273_v9, %v1141_v54  ;;  %v1294_v58 = vmul.f32 %v1480_v55, %v1273_v9  ;;  %v1222_v59 = vpop.f32.mrb[1].mxu0 }
 0x199   :  { %v1328_v60 = vadd.f32 %v1311_v25, %v1292_v53  ;;  %v1337_v61 = vadd.f32 %v1319_v48, %v1301_v52  ;;  %v1289_v62 = vmul.f32 %v1268_v10, %v1222_v59 }
 0x19a   :  { %1356 = vst [vmem:[%s1895_s4 + $0x78] sm:$0xff] %v1336_v56  ;;  %v1329_v63 = vadd.f32 %v1311_v25, %v1293_v57  ;;  %v1330_v0 = vadd.f32 %v1311_v25, %v1294_v58  ;;  %v1145_v1 = vpop.f32.mrb[12].mxu1 }
 0x19b   :  { %1348 = vst [vmem:[%s1895_s4 + $0x38] sm:$0xff] %v1328_v60  ;;  %1357 = vst [vmem:[%s1895_s4 + $0x80] sm:$0xff] %v1337_v61  ;;  %v1325_v3 = vadd.f32 %v1307_v16, %v1289_v62  ;;  %v1297_v4 = vmul.f32 %v1817_v11, %v1145_v1  ;;  %v1147_v5 = vpop.f32.mrb[13].mxu1  ;;  %v1483_v6 = vpop.f32.mrb[2].mxu0 }
 0x19c   :  { %1349 = vst [vmem:[%s1895_s4 + $0x40] sm:$0xff] %v1329_v63  ;;  %1350 = vst [vmem:[%s1895_s4 + $0x48] sm:$0xff] %v1330_v0  ;;  %v1298_v7 = vmul.f32 %v1817_v11, %v1147_v5  ;;  %v1304_v8 = vmul.f32 %v1483_v6, %v1819_v13  ;;  %v1232_v9 = vpop.f32.mrb[3].mxu0 }
 0x19d   :  { %1345 = vst [vmem:[%s1895_s4 + $0x20] sm:$0xff] %v1325_v3  ;;  %v1333_v10 = vadd.f32 %v1315_v29, %v1297_v4  ;;  %v1299_v12 = vmul.f32 %v1817_v11, %v1232_v9 }
 0x19e   :  { %v1334_v14 = vadd.f32 %v1315_v29, %v1298_v7  ;;  %v1340_v15 = vadd.f32 %v1319_v48, %v1304_v8  ;;  %v1151_v2 = vpop.f32.mrb[14].mxu1 }
 0x19f   :  { %1353 = vst [vmem:[%s1895_s4 + $0x60] sm:$0xff] %v1333_v10  ;;  %v1335_v16 = vadd.f32 %v1315_v29, %v1299_v12  ;;  %v1302_v17 = vmul.f32 %v1819_v13, %v1151_v2  ;;  %v1153_v18 = vpop.f32.mrb[15].mxu1 }
 0x1a0   :  { %1354 = vst [vmem:[%s1895_s4 + $0x68] sm:$0xff] %v1334_v14  ;;  %1360 = vst [vmem:[%s1895_s4 + $0x98] sm:$0xff] %v1340_v15  ;;  %v1303_v11 = vmul.f32 %v1819_v13, %v1153_v18 }
 0x1a1   :  { %1355 = vst [vmem:[%s1895_s4 + $0x70] sm:$0xff] %v1335_v16  ;;  %v1338_v19 = vadd.f32 %v1319_v48, %v1302_v17 }
 0x1a2   :  { %v1339_v20 = vadd.f32 %v1319_v48, %v1303_v11 }
 0x1a3   :  { %1358 = vst [vmem:[%s1895_s4 + $0x88] sm:$0xff] %v1338_v19 }
 0x1a4   :  { %1359 = vst [vmem:[%s1895_s4 + $0x90] sm:$0xff] %v1339_v20 }

// kernel: conv2d_transpose_batchnorm.2
= control target key start
LH: loop header
LB: loop body
LE: loop exit
PB: predicated region body
PF: predicated region fallthrough
CT: control target
= control target key end

     0   :  { %v1523_v2 = vmov 0.0   ;;  %s1524_s16 = smov 127   ;;  %vm71_vm0 = vcmask 64512   ;;  %s1525_s27 = smov 111   ;;  %v58_v8 = vlaneseq  ;;  %vm1282_vm4 = vcmask 7168   ;;  %s1760_s0 = inlined_call_operand.vmem [shape: f32[8,768], index: 0, kind: input, shape index: {}, may-alias: {0,1}]   ;;  %s1761_s2 = inlined_call_operand.vmem [shape: f32[4,32,8], index: 2, kind: input, shape index: {}]   ;;  %s1762_s1 = inlined_call_operand.vmem [shape: f32[8,768], index: 1, kind: input, shape index: {}, may-alias: {0,1}]   ;;  %s1763_s3 = inlined_call_operand.vmem [shape: f32[1,32,2], index: 3, kind: output, shape index: {}]  }
   0x1   :  { %v37_v0 = vld [vmem:[%s1760_s0 + $0x8] sm:$0xff]  ;;  %v36_v1 = vld [vmem:[%s1760_s0] sm:$0xff]  ;;  %148 = vmatprep.mubr.f32.mxu1 %v1523_v2  ;;  %v1557_v3 = vld [vmem:[%s1760_s0 + $0x10] sm:$0xff]  ;;  %s1526_s28 = smov 110   ;;  %vm1331_vm5 = vcmask 15368  }
   0x2   :  { %48 = vrot.lane.b32.xlu0 %v37_v0, %s1524_s16  ;;  %46 = vrot.lane.b32.xlu1 %v36_v1, %s1524_s16  ;;  %v1562_v4 = vld [vmem:[%s1760_s0 + $0x20] sm:$0xff]  ;;  %v1346_v6 = vld [vmem:[%s1762_s1 + $0x28] sm:$0xff]  ;;  %v1583_v9 = vand.u32 127, %v58_v8 }
   0x3   :  { %v1567_v5 = vld [vmem:[%s1761_s2 + $0x20] sm:$0xff]  ;;  %v39_v7 = vld [vmem:[%s1760_s0 + $0x18] sm:$0xff]  ;;  %v1348_v21 = vld [vmem:[%s1761_s2 + $0x28] sm:$0xff] }
   0x4   :  { %1429 = vmatprep.mubr.msk.f32.mxu0 %vm71_vm0, %v1567_v5  ;;  %vm60_vm1 = vcmp.lt.s32.totalorder %v1583_v9, 127  ;;  %v1349_v22 = vld [vmem:[%s1761_s2 + $0x30] sm:$0xff]  ;;  %v1350_v24 = vld [vmem:[%s1761_s2 + $0x38] sm:$0xff]  ;;  %vm634_vm2 = vcmp.lt.s32.totalorder %v1583_v9, 111  ;;  %v42_v27 = vld [vmem:[%s1761_s2] sm:$0xff]  ;;  %vm952_vm3 = vcmp.lt.s32.totalorder %v1583_v9, 110 }
   0x5   :  { %v43_v31 = vld [vmem:[%s1761_s2 + $0x8] sm:$0xff]  ;;  %v44_v35 = vld [vmem:[%s1761_s2 + $0x10] sm:$0xff]  ;;  %v45_v36 = vld [vmem:[%s1761_s2 + $0x18] sm:$0xff] }
   0x6   :  { %50 = vrot.lane.b32.xlu0 %v1557_v3, %s1524_s16  ;;  %54 = vrot.lane.b32.xlu1 %v1562_v4, %s1524_s16  ;;  %v1375_v45 = vld [vmem:[%s1761_s2 + $0x40] sm:$0xff]  ;;  %v1376_v47 = vld [vmem:[%s1761_s2 + $0x48] sm:$0xff] }
   0x7   :  { %v1377_v48 = vld [vmem:[%s1761_s2 + $0x50] sm:$0xff]  ;;  %v1378_v49 = vld [vmem:[%s1761_s2 + $0x58] sm:$0xff]  ;;  %v1391_v54 = vld [vmem:[%s1761_s2 + $0x60] sm:$0xff] }
   0x8   :  { %v1392_v55 = vld [vmem:[%s1761_s2 + $0x68] sm:$0xff]  ;;  %v1393_v56 = vld [vmem:[%s1761_s2 + $0x70] sm:$0xff]  ;;  %v1394_v57 = vld [vmem:[%s1761_s2 + $0x78] sm:$0xff] }
   0xa   :  { %56 = vrot.lane.b32.xlu0 %v1346_v6, %s1524_s16  ;;  %52 = vrot.lane.b32.xlu1 %v39_v7, %s1524_s16 }
   0xe   :  { %624 = vrot.lane.b32.xlu0 %v37_v0, %s1525_s27  ;;  %626 = vrot.lane.b32.xlu1 %v1557_v3, %s1525_s27 }
  0x12   :  { %622 = vrot.lane.b32.xlu0 %v36_v1, %s1525_s27  ;;  %628 = vrot.lane.b32.xlu1 %v39_v7, %s1525_s27 }
  0x16   :  { %630 = vrot.lane.b32.xlu0 %v1562_v4, %s1525_s27  ;;  %632 = vrot.lane.b32.xlu1 %v1346_v6, %s1525_s27 }
  0x1a   :  { %942 = vrot.lane.b32.xlu0 %v37_v0, %s1526_s28  ;;  %944 = vrot.lane.b32.xlu1 %v1557_v3, %s1526_s28 }
  0x1e   :  { %940 = vrot.lane.b32.xlu0 %v36_v1, %s1526_s28  ;;  %946 = vrot.lane.b32.xlu1 %v39_v7, %s1526_s28 }
  0x22   :  { %948 = vrot.lane.b32.xlu0 %v1562_v4, %s1526_s28  ;;  %950 = vrot.lane.b32.xlu1 %v1346_v6, %s1526_s28 }
  0x74   :  { %v49_v10 = vpop.permute.xlu0 %48  ;;  %v47_v11 = vpop.permute.xlu1 %46 }
  0x75   :  { %v65_v15 = vsel %vm60_vm1, %v47_v11, %v49_v10 }
  0x78   :  { %v51_v12 = vpop.permute.xlu0 %50  ;;  %v55_v13 = vpop.permute.xlu1 %54 }
  0x79   :  { %v64_v14 = vsel %vm60_vm1, %v49_v10, %v51_v12 }
  0x7a   :  { %84 = vmatprep.subr.mxu1 %v64_v14 }
  0x7b   :  { %85 = vmatpush1.msra.mxu1 %v65_v15 }
  0x7c   :  { %v57_v16 = vpop.permute.xlu0 %56  ;;  %1351 = vmatmul.mubr.msk.f32.vlgmr.msra.gmra.mrb[0].mxu1 %vm71_vm0, %v1567_v5  ;;  %v53_v17 = vpop.permute.xlu1 %52 }
  0x7d   :  { %v63_v18 = vsel %vm60_vm1, %v51_v12, %v53_v17  ;;  %v62_v19 = vsel %vm60_vm1, %v53_v17, %v55_v13  ;;  %v61_v20 = vsel %vm60_vm1, %v55_v13, %v57_v16  ;;  %154 = vmatprep.mubr.f32.mxu1 %v1523_v2 }
  0x7e   :  { %173 = vmatprep.subr.mxu1 %v62_v19  ;;  %1427 = vmatprep.subr.mxu0 %v61_v20 }
  0x7f   :  { %174 = vmatpush1.msra.mxu1 %v63_v18  ;;  %1428 = vmatpush3.msra.mxu0 %v61_v20 }
  0x80   :  { %1352 = vmatmul.mubr.msk.f32.gmra.mrb[2].mxu1 %vm71_vm0, %v1348_v21  ;;  %1430 = vmatmul.mubr.msk.f32.vlgmr.msra.gmra.mrb[0].mxu0 %vm71_vm0, %v1348_v21  ;;  %v625_v23 = vpop.permute.xlu0 %624  ;;  %v627_v25 = vpop.permute.xlu1 %626 }
  0x81   :  { %359 = vmatprep.subr.mxu0 %v37_v0  ;;  %160 = vmatprep.mubr.f32.mxu1 %v1523_v2  ;;  %v638_v28 = vsel %vm634_vm2, %v625_v23, %v627_v25 }
  0x82   :  { %360 = vmatpush1.msra.mxu0 %v36_v1  ;;  %1432 = vmatprep.mubr.msk.f32.mxu0 %vm71_vm0, %v1349_v22 }
  0x83   :  { %1435 = vmatprep.subr.mxu0 %v1562_v4  ;;  %448 = vmatprep.subr.mxu1 %v39_v7 }
  0x84   :  { %1353 = vmatmul.mubr.msk.f32.gmra.mrb[4].mxu1 %vm71_vm0, %v1349_v22  ;;  %1433 = vmatmul.mubr.msk.f32.gmra.mrb[2].mxu0 %vm71_vm0, %v1350_v24  ;;  %v623_v26 = vpop.permute.xlu0 %622  ;;  %v629_v29 = vpop.permute.xlu1 %628 }
  0x85   :  { %166 = vmatprep.mubr.f32.mxu1 %v1523_v2  ;;  %423 = vmatprep.mubr.f32.mxu0 %v1523_v2  ;;  %v639_v39 = vsel %vm634_vm2, %v623_v26, %v625_v23  ;;  %v637_v43 = vsel %vm634_vm2, %v627_v25, %v629_v29 }
  0x88   :  { %1354 = vmatmul.mubr.msk.f32.gmra.mrb[6].mxu1 %vm71_vm0, %v1350_v24  ;;  %1363 = vmatmul.mubr.msk.f32.vlgmr.msra.gmra.mrb[4].mxu0 %vm71_vm0, %v42_v27  ;;  %v631_v30 = vpop.permute.xlu0 %630  ;;  %v633_v33 = vpop.permute.xlu1 %632 }
  0x89   :  { %1436 = vmatpush3.msra.mxu0 %v1562_v4  ;;  %237 = vmatprep.mubr.f32.mxu1 %v1523_v2  ;;  %v636_v32 = vsel %vm634_vm2, %v629_v29, %v631_v30  ;;  %v635_v40 = vsel %vm634_vm2, %v631_v30, %v633_v33 }
  0x8a   :  { %429 = vmatprep.mubr.f32.mxu0 %v1523_v2  ;;  %657 = vmatprep.subr.mxu0 %v638_v28 }
  0x8c   :  { %1355 = vmatmul.mubr.msk.f32.vlgmr.msra.gmra.mrb[8].mxu1 %vm71_vm0, %v1567_v5  ;;  %1364 = vmatmul.mubr.msk.f32.gmra.mrb[6].mxu0 %vm71_vm0, %v43_v31  ;;  %v943_v34 = vpop.permute.xlu0 %942  ;;  %v945_v38 = vpop.permute.xlu1 %944 }
  0x8d   :  { %243 = vmatprep.mubr.f32.mxu1 %v1523_v2  ;;  %435 = vmatprep.mubr.f32.mxu0 %v1523_v2  ;;  %v956_v46 = vsel %vm952_vm3, %v943_v34, %v945_v38 }
  0x8e   :  { %449 = vmatpush1.msra.mxu1 %v1557_v3 }
  0x8f   :  { %746 = vmatprep.subr.mxu1 %v636_v32 }
  0x90   :  { %1356 = vmatmul.mubr.msk.f32.gmra.mrb[10].mxu1 %vm71_vm0, %v1348_v21  ;;  %1365 = vmatmul.mubr.msk.f32.gmra.mrb[8].mxu0 %vm71_vm0, %v44_v35  ;;  %v941_v37 = vpop.permute.xlu0 %940  ;;  %v947_v42 = vpop.permute.xlu1 %946 }
  0x91   :  { %249 = vmatprep.mubr.f32.mxu1 %v1523_v2  ;;  %441 = vmatprep.mubr.f32.mxu0 %v1523_v2  ;;  %v955_v50 = vsel %vm952_vm3, %v945_v38, %v947_v42  ;;  %v957_v52 = vsel %vm952_vm3, %v941_v37, %v943_v34 }
  0x94   :  { %1357 = vmatmul.mubr.msk.f32.gmra.mrb[12].mxu1 %vm71_vm0, %v1349_v22  ;;  %1366 = vmatmul.mubr.msk.f32.gmra.mrb[10].mxu0 %vm71_vm0, %v45_v36  ;;  %v949_v41 = vpop.permute.xlu0 %948  ;;  %v951_v51 = vpop.permute.xlu1 %950 }
  0x95   :  { %255 = vmatprep.mubr.f32.mxu1 %v1523_v2  ;;  %1437 = vmatprep.mubr.msk.f32.mxu0 %vm71_vm0, %v42_v27  ;;  %v954_v44 = vsel %vm952_vm3, %v947_v42, %v949_v41  ;;  %v953_v53 = vsel %vm952_vm3, %v949_v41, %v951_v51 }
  0x98   :  { %1358 = vmatmul.mubr.msk.f32.gmra.mrb[14].mxu1 %vm71_vm0, %v1350_v24  ;;  %1438 = vmatmul.mubr.msk.f32.vlgmr.msra.gmra.mrb[0].mxu0 %vm71_vm0, %v43_v31 }
  0x99   :  { %658 = vmatpush1.msra.mxu0 %v639_v39  ;;  %512 = vmatprep.mubr.f32.mxu1 %v1523_v2 }
  0x9a   :  { %1440 = vmatprep.mubr.msk.f32.mxu0 %vm71_vm0, %v44_v35  ;;  %1443 = vmatprep.subr.mxu0 %v635_v40 }
  0x9c   :  { %1367 = vmatmul.mubr.msk.f32.vlgmr.msra.gmra.mrb[8].mxu1 %vm71_vm0, %v42_v27  ;;  %1441 = vmatmul.mubr.msk.f32.gmra.mrb[2].mxu0 %vm71_vm0, %v45_v36 }
  0x9d   :  { %747 = vmatpush1.msra.mxu1 %v637_v43  ;;  %518 = vmatprep.mubr.f32.mxu1 %v1523_v2 }
  0x9e   :  { %721 = vmatprep.mubr.f32.mxu0 %v1523_v2  ;;  %1064 = vmatprep.subr.mxu1 %v954_v44 }
  0xa0   :  { %1368 = vmatmul.mubr.msk.f32.gmra.mrb[10].mxu1 %vm71_vm0, %v43_v31  ;;  %1379 = vmatmul.mubr.msk.f32.vlgmr.msra.gmra.mrb[4].mxu0 %vm71_vm0, %v1375_v45 }
  0xa1   :  { %1444 = vmatpush3.msra.mxu0 %v635_v40  ;;  %524 = vmatprep.mubr.f32.mxu1 %v1523_v2 }
  0xa2   :  { %727 = vmatprep.mubr.f32.mxu0 %v1523_v2  ;;  %975 = vmatprep.subr.mxu0 %v956_v46 }
  0xa4   :  { %1369 = vmatmul.mubr.msk.f32.gmra.mrb[12].mxu1 %vm71_vm0, %v44_v35  ;;  %1380 = vmatmul.mubr.msk.f32.gmra.mrb[6].mxu0 %vm71_vm0, %v1376_v47 }
  0xa5   :  { %530 = vmatprep.mubr.f32.mxu1 %v1523_v2  ;;  %733 = vmatprep.mubr.f32.mxu0 %v1523_v2 }
  0xa8   :  { %1370 = vmatmul.mubr.msk.f32.gmra.mrb[14].mxu1 %vm71_vm0, %v45_v36  ;;  %1381 = vmatmul.mubr.msk.f32.gmra.mrb[8].mxu0 %vm71_vm0, %v1377_v48 }
  0xa9   :  { %739 = vmatprep.mubr.f32.mxu0 %v1523_v2  ;;  %810 = vmatprep.mubr.f32.mxu1 %v1523_v2 }
  0xac   :  { %1382 = vmatmul.mubr.msk.f32.gmra.mrb[10].mxu0 %vm71_vm0, %v1378_v49  ;;  %1383 = vmatmul.mubr.msk.f32.vlgmr.msra.gmra.mrb[8].mxu1 %vm71_vm0, %v1375_v45 }
  0xad   :  { %816 = vmatprep.mubr.f32.mxu1 %v1523_v2  ;;  %1445 = vmatprep.mubr.msk.f32.mxu0 %vm71_vm0, %v1375_v45 }
  0xae   :  { %1065 = vmatpush1.msra.mxu1 %v955_v50 }
  0xb0   :  { %1384 = vmatmul.mubr.msk.f32.gmra.mrb[10].mxu1 %vm71_vm0, %v1376_v47  ;;  %1446 = vmatmul.mubr.msk.f32.vlgmr.msra.gmra.mrb[0].mxu0 %vm71_vm0, %v1376_v47 }
  0xb1   :  { %976 = vmatpush1.msra.mxu0 %v957_v52  ;;  %822 = vmatprep.mubr.f32.mxu1 %v1523_v2 }
  0xb2   :  { %1448 = vmatprep.mubr.msk.f32.mxu0 %vm71_vm0, %v1377_v48  ;;  %1451 = vmatprep.subr.mxu0 %v953_v53 }
  0xb4   :  { %1385 = vmatmul.mubr.msk.f32.gmra.mrb[12].mxu1 %vm71_vm0, %v1377_v48  ;;  %1449 = vmatmul.mubr.msk.f32.gmra.mrb[2].mxu0 %vm71_vm0, %v1378_v49 }
  0xb5   :  { %828 = vmatprep.mubr.f32.mxu1 %v1523_v2  ;;  %1039 = vmatprep.mubr.f32.mxu0 %v1523_v2 }
  0xb8   :  { %1386 = vmatmul.mubr.msk.f32.gmra.mrb[14].mxu1 %vm71_vm0, %v1378_v49  ;;  %1395 = vmatmul.mubr.msk.f32.vlgmr.msra.gmra.mrb[4].mxu0 %vm71_vm0, %v1391_v54 }
  0xb9   :  { %1452 = vmatpush3.msra.mxu0 %v953_v53  ;;  %1045 = vmatprep.mubr.f32.mxu0 %v1523_v2 }
  0xba   :  { %1128 = vmatprep.mubr.f32.mxu1 %v1523_v2 }
  0xbc   :  { %1396 = vmatmul.mubr.msk.f32.gmra.mrb[6].mxu0 %vm71_vm0, %v1392_v55  ;;  %1399 = vmatmul.mubr.msk.f32.vlgmr.msra.gmra.mrb[8].mxu1 %vm71_vm0, %v1391_v54 }
  0xbd   :  { %1051 = vmatprep.mubr.f32.mxu0 %v1523_v2  ;;  %1134 = vmatprep.mubr.f32.mxu1 %v1523_v2 }
  0xc0   :  { %1397 = vmatmul.mubr.msk.f32.gmra.mrb[8].mxu0 %vm71_vm0, %v1393_v56  ;;  %1400 = vmatmul.mubr.msk.f32.gmra.mrb[10].mxu1 %vm71_vm0, %v1392_v55 }
  0xc1   :  { %1057 = vmatprep.mubr.f32.mxu0 %v1523_v2  ;;  %1140 = vmatprep.mubr.f32.mxu1 %v1523_v2 }
  0xc4   :  { %1398 = vmatmul.mubr.msk.f32.gmra.mrb[10].mxu0 %vm71_vm0, %v1394_v57  ;;  %1401 = vmatmul.mubr.msk.f32.gmra.mrb[12].mxu1 %vm71_vm0, %v1393_v56 }
  0xc5   :  { %1146 = vmatprep.mubr.f32.mxu1 %v1523_v2  ;;  %1453 = vmatprep.mubr.msk.f32.mxu0 %vm71_vm0, %v1391_v54 }
  0xc8   :  { %1402 = vmatmul.mubr.msk.f32.gmra.mrb[14].mxu1 %vm71_vm0, %v1394_v57  ;;  %1454 = vmatmul.mubr.msk.f32.vlgmr.msra.gmra.mrb[0].mxu0 %vm71_vm0, %v1392_v55 }
  0xc9   :  { %1456 = vmatprep.mubr.msk.f32.mxu0 %vm71_vm0, %v1393_v56 }
  0xcc   :  { %1457 = vmatmul.mubr.msk.f32.gmra.mrb[2].mxu0 %vm71_vm0, %v1394_v57 }
 0x14f   :  { %v150_v58 = vpop.f32.mrb[0].mxu1 }
 0x150   :  { %v152_v59 = vpop.f32.mrb[1].mxu1 }
 0x153   :  { %v156_v60 = vpop.f32.mrb[2].mxu1 }
 0x154   :  { %v158_v61 = vpop.f32.mrb[3].mxu1 }
 0x157   :  { %v162_v62 = vpop.f32.mrb[4].mxu1 }
 0x158   :  { %v164_v63 = vpop.f32.mrb[5].mxu1 }
 0x15b   :  { %v168_v0 = vpop.f32.mrb[6].mxu1 }
 0x15c   :  { %v170_v1 = vpop.f32.mrb[7].mxu1 }
 0x18b   :  { %v1041_v3 = vpop.f32.mrb[4].mxu0 }
 0x18c   :  { %v1459_v2 = vadd.f32 %v1041_v3, %v150_v58  ;;  %v1043_v4 = vpop.f32.mrb[5].mxu0 }
 0x18d   :  { %v1460_v5 = vadd.f32 %v1043_v4, %v152_v59 }
 0x18e   :  { %v1287_v6 = vmul.f32 %v1459_v2, %v1459_v2 }
 0x18f   :  { %v1258_v7 = vadd.f32 %v1460_v5, %v1459_v2  ;;  %v1288_v8 = vmul.f32 %v1460_v5, %v1460_v5  ;;  %v1047_v9 = vpop.f32.mrb[6].mxu0  ;;  %v1130_v10 = vpop.f32.mrb[8].mxu1 }
 0x190   :  { %v1461_v11 = vadd.f32 %v1047_v9, %v156_v60  ;;  %v1289_v12 = vmul.f32 %v1130_v10, %v1130_v10  ;;  %v1049_v13 = vpop.f32.mrb[7].mxu0  ;;  %v1132_v14 = vpop.f32.mrb[9].mxu1 }
 0x191   :  { %v1307_v15 = vadd.f32 %v1288_v8, %v1287_v6  ;;  %v1259_v16 = vadd.f32 %v1258_v7, %v1130_v10  ;;  %v1462_v17 = vadd.f32 %v1049_v13, %v158_v61  ;;  %v1290_v25 = vmul.f32 %v1132_v14, %v1132_v14 }
 0x192   :  { %v1292_v18 = vmul.f32 %v1461_v11, %v1461_v11 }
 0x193   :  { %v1308_v19 = vadd.f32 %v1307_v15, %v1289_v12  ;;  %v1264_v20 = vadd.f32 %v1462_v17, %v1461_v11  ;;  %v1293_v21 = vmul.f32 %v1462_v17, %v1462_v17  ;;  %v1260_v22 = vadd.f32 %v1259_v16, %v1132_v14  ;;  %v1053_v23 = vpop.f32.mrb[8].mxu0  ;;  %v1136_v24 = vpop.f32.mrb[10].mxu1 }
 0x194   :  { %v1463_v26 = vadd.f32 %v1053_v23, %v162_v62  ;;  %v1294_v27 = vmul.f32 %v1136_v24, %v1136_v24  ;;  %v1055_v28 = vpop.f32.mrb[9].mxu0  ;;  %v1138_v29 = vpop.f32.mrb[11].mxu1 }
 0x195   :  { %v1313_v30 = vadd.f32 %v1293_v21, %v1292_v18  ;;  %v1265_v31 = vadd.f32 %v1264_v20, %v1136_v24  ;;  %v1464_v32 = vadd.f32 %v1055_v28, %v164_v63  ;;  %v1309_v34 = vadd.f32 %v1308_v19, %v1290_v25 }
 0x196   :  { %v1297_v33 = vmul.f32 %v1463_v26, %v1463_v26  ;;  %v1295_v41 = vmul.f32 %v1138_v29, %v1138_v29 }
 0x197   :  { %v1314_v35 = vadd.f32 %v1313_v30, %v1294_v27  ;;  %v1270_v36 = vadd.f32 %v1464_v32, %v1463_v26  ;;  %v1298_v37 = vmul.f32 %v1464_v32, %v1464_v32  ;;  %v1266_v38 = vadd.f32 %v1265_v31, %v1138_v29  ;;  %v1059_v39 = vpop.f32.mrb[10].mxu0  ;;  %v1142_v40 = vpop.f32.mrb[12].mxu1 }
 0x198   :  { %v1465_v42 = vadd.f32 %v1059_v39, %v168_v0  ;;  %v1299_v43 = vmul.f32 %v1142_v40, %v1142_v40  ;;  %v1061_v44 = vpop.f32.mrb[11].mxu0  ;;  %v1144_v45 = vpop.f32.mrb[13].mxu1 }
 0x199   :  { %v1319_v46 = vadd.f32 %v1298_v37, %v1297_v33  ;;  %v1271_v47 = vadd.f32 %v1270_v36, %v1142_v40  ;;  %v1466_v48 = vadd.f32 %v1061_v44, %v170_v1  ;;  %v1315_v50 = vadd.f32 %v1314_v35, %v1295_v41 }
 0x19a   :  { %v1302_v49 = vmul.f32 %v1465_v42, %v1465_v42  ;;  %v1300_v57 = vmul.f32 %v1144_v45, %v1144_v45 }
 0x19b   :  { %v1320_v51 = vadd.f32 %v1319_v46, %v1299_v43  ;;  %v1276_v52 = vadd.f32 %v1466_v48, %v1465_v42  ;;  %v1303_v53 = vmul.f32 %v1466_v48, %v1466_v48  ;;  %v1272_v54 = vadd.f32 %v1271_v47, %v1144_v45  ;;  %v1148_v55 = vpop.f32.mrb[14].mxu1  ;;  %v1455_v56 = vpop.f32.mrb[0].mxu0 }
 0x19c   :  { %v1304_v58 = vmul.f32 %v1148_v55, %v1148_v55  ;;  %v1296_v59 = vmul.f32 %v1455_v56, %v1455_v56  ;;  %v1150_v60 = vpop.f32.mrb[15].mxu1  ;;  %v1219_v61 = vpop.f32.mrb[1].mxu0  ;;  %v1267_v62 = vadd.f32 %v1455_v56, %v1266_v38 }
 0x19d   :  { %v1325_v63 = vadd.f32 %v1303_v53, %v1302_v49  ;;  %v1277_v0 = vadd.f32 %v1276_v52, %v1148_v55  ;;  %v1291_v3 = vmul.f32 %v1219_v61, %v1219_v61  ;;  %v1261_v2 = vadd.f32 %v1260_v22, %v1219_v61 }
 0x19e   :  { %1268 = vadd.xlane.f32.xlu1 %v1267_v62  ;;  %v1316_v1 = vadd.f32 %v1315_v50, %v1296_v59  ;;  %v1321_v4 = vadd.f32 %v1320_v51, %v1300_v57  ;;  %v1305_v7 = vmul.f32 %v1150_v60, %v1150_v60 }
 0x19f   :  { %v1326_v5 = vadd.f32 %v1325_v63, %v1304_v58  ;;  %v1278_v6 = vadd.f32 %v1277_v0, %v1150_v60  ;;  %v1458_v8 = vpop.f32.mrb[2].mxu0  ;;  %v1310_v9 = vadd.f32 %v1309_v34, %v1291_v3  ;;  %1262 = vadd.xlane.f32.xlu0 %v1261_v2 }
 0x1a0   :  { %v1306_v10 = vmul.f32 %v1458_v8, %v1458_v8  ;;  %v1229_v11 = vpop.f32.mrb[3].mxu0 }
 0x1a1   :  { %v1327_v12 = vadd.f32 %v1326_v5, %v1305_v7  ;;  %v1273_v13 = vadd.f32 %v1272_v54, %v1229_v11  ;;  %v1301_v14 = vmul.f32 %v1229_v11, %v1229_v11  ;;  %v1279_v15 = vadd.f32 %v1458_v8, %v1278_v6 }
 0x1a2   :  { %1311 = vadd.xlane.f32.xlu1 %v1310_v9 }
 0x1a3   :  { %v1322_v16 = vadd.f32 %v1321_v4, %v1301_v14  ;;  %v1328_v17 = vadd.f32 %v1327_v12, %v1306_v10  ;;  %1317 = vadd.xlane.f32.xlu0 %v1316_v1 }
 0x1a6   :  { %1323 = vadd.xlane.f32.xlu1 %v1322_v16 }
 0x1a7   :  { %1274 = vadd.xlane.f32.xlu0 %v1273_v13 }
 0x1ab   :  { %1280 = vadd.xlane.f32.xlu0 %v1279_v15 }
 0x1af   :  { %1329 = vadd.xlane.f32.xlu0 %v1328_v17 }
 0x22b   :  { %v1269_v18 = vpop.xlane.xlu1 %1268 }
 0x22c   :  { %1284 = vst.msk [vmem:[%s1763_s3 + $0x8] sm:$0xff] %vm1282_vm4, %v1269_v18  ;;  %v1263_v19 = vpop.xlane.xlu0 %1262 }
 0x22d   :  { %1283 = vst.msk [vmem:[%s1763_s3] sm:$0xff] %vm1282_vm4, %v1263_v19 }
 0x22f   :  { %v1312_v20 = vpop.xlane.xlu1 %1311 }
 0x230   :  { %1332 = vst.msk [vmem:[%s1763_s3] sm:$0xff] %vm1331_vm5, %v1312_v20  ;;  %v1318_v21 = vpop.xlane.xlu0 %1317 }
 0x231   :  { %1333 = vst.msk [vmem:[%s1763_s3 + $0x8] sm:$0xff] %vm1331_vm5, %v1318_v21 }
 0x233   :  { %v1324_v23 = vpop.xlane.xlu1 %1323 }
 0x234   :  { %v1275_v22 = vpop.xlane.xlu0 %1274 }
 0x235   :  { %1285 = vst.msk [vmem:[%s1763_s3 + $0x10] sm:$0xff] %vm1282_vm4, %v1275_v22 }
 0x236   :  { %1334 = vst.msk [vmem:[%s1763_s3 + $0x10] sm:$0xff] %vm1331_vm5, %v1324_v23 }
 0x238   :  { %v1281_v24 = vpop.xlane.xlu0 %1280 }
 0x239   :  { %1286 = vst.msk [vmem:[%s1763_s3 + $0x18] sm:$0xff] %vm1282_vm4, %v1281_v24 }
 0x23c   :  { %v1330_v25 = vpop.xlane.xlu0 %1329 }
 0x23d   :  { %1335 = vst.msk [vmem:[%s1763_s3 + $0x18] sm:$0xff] %vm1331_vm5, %v1330_v25 }

</bundles_post_ra>
